<compile_context>
chip_gen: v7x
topology: tpu7x:2x2x1
jax: 0.10.0
libtpu: 0.0.40
codegen_flags: <defaults>
</compile_context>

<pallas_src>
import jax
import jax.numpy as jnp
from jax.experimental import pallas as pl
from jax.experimental.pallas import tpu as pltpu


# ----------------------------------------------------------------------------
# Fused attention kernel: one (image-group, spatial-tile) per grid step.
# ----------------------------------------------------------------------------
def _attention_kernel(x_ref, w1_ref, b1_ref, w2_ref, b2_ref, w3_ref, b3_ref,
                      o_ref):
    # x_ref : (BN, Cin, TS)    input tile, spatial on lanes
    # w1    : (Cout, Cin) bf16     b1 : (Cout, 1) f32
    # w2    : (Cout, Cout) bf16    b2 : (Cout, 1) f32
    # w3    : (1, Cout) bf16       b3 : (1,) f32 scalar in SMEM
    # o_ref : (BN, Cin, TS)
    b3 = b3_ref[0]                                            # scalar (SMEM)
    bn = x_ref.shape[0]                                       # static

    for b in range(bn):                                       # unrolled
        x = x_ref[b]                                          # (Cin, TS)

        h1 = jnp.dot(w1_ref[...], x.astype(jnp.bfloat16),
                     preferred_element_type=jnp.float32) + b1_ref[...]
        h1 = jnp.maximum(h1, 0.0)                             # ReLU(x1), f32

        h2 = jnp.dot(w2_ref[...], h1.astype(jnp.bfloat16),
                     preferred_element_type=jnp.float32) + b2_ref[...]
        h2 = jnp.maximum(h2, 0.0)                             # ReLU(x2), f32

        z = jnp.dot(w3_ref[...], h2.astype(jnp.bfloat16),
                    preferred_element_type=jnp.float32) + b3  # (1, TS)
        att = pl.reciprocal(1.0 + jnp.exp(-z), approx=True)   # sigmoid (EUP)

        o_ref[b] = (x * att).astype(o_ref.dtype)              # gate input


# ----------------------------------------------------------------------------
# Tile sizing: model the real per-step VMEM footprint.
# ----------------------------------------------------------------------------
def _pick_tiles(n, hw_padded, cin, cout, in_bytes,
                budget_bytes=6 * 1024 * 1024):
    """Pick (BN images per step, TS spatial elems per step).

    Per-spatial-element, per-image footprint includes the double-buffered
    input and output blocks, the two (Cout, TS) f32 intermediates and the
    bf16 operand copies fed to the MXU.
    """
    per_elem = (2 * cin * in_bytes        # input block, double-buffered
                + 2 * cin * in_bytes      # output block, double-buffered
                + 2 * cout * 4            # h1, h2 f32 intermediates
                + cin * 2 + cout * 2)     # bf16 operand copies
    max_elems = max(128, budget_bytes // per_elem)

    # Largest multiple of 128 dividing hw_padded that fits the budget.
    m = hw_padded // 128
    best_d = 1
    for d in range(1, m + 1):
        if m % d == 0 and 128 * d <= max_elems:
            best_d = d
    ts = 128 * best_d

    # Small images (one spatial tile per image): amortize the per-step
    # overhead by batching images, but keep >= 2 grid steps when possible
    # so megacore / v7x's two TensorCores both get work.
    bn = 1
    steps_per_image = hw_padded // ts
    if steps_per_image == 1:
        for cand in range(1, n + 1):
            if n % cand != 0:
                continue
            if cand * ts * per_elem > budget_bytes:
                break
            if n >= 2 and (n // cand) * steps_per_image < 2:
                break
            bn = cand
    return bn, ts


# ----------------------------------------------------------------------------
# Wrapper
# ----------------------------------------------------------------------------
def attention_forward(x_nchw, params):
    (w1, b1), (w2, b2), (w3, b3) = params
    N, Cin, H, W = x_nchw.shape
    Cout = w1.shape[0]
    HW = H * W

    # Pad the flattened spatial axis up to a multiple of 128 so every block is
    # lane-dense and no full-extent fallback tile is ever needed.
    HWp = ((HW + 127) // 128) * 128
    xf = x_nchw.reshape(N, Cin, HW)
    if HWp != HW:
        xf = jnp.pad(xf, ((0, 0), (0, 0), (0, HWp - HW)))

    BN, TS = _pick_tiles(N, HWp, Cin, Cout, jnp.dtype(x_nchw.dtype).itemsize)
    grid = (N // BN, HWp // TS)

    # bf16 MXU operands (weights are tiny; accumulation stays f32 in-kernel).
    w1b = w1.astype(jnp.bfloat16)
    w2b = w2.astype(jnp.bfloat16)
    w3b = w3.reshape(1, Cout).astype(jnp.bfloat16)

    out = pl.pallas_call(
        _attention_kernel,
        out_shape=jax.ShapeDtypeStruct((N, Cin, HWp), x_nchw.dtype),
        grid=grid,
        in_specs=[
            pl.BlockSpec((BN, Cin, TS), lambda n, s: (n, 0, s)),
            pl.BlockSpec((Cout, Cin), lambda n, s: (0, 0)),
            pl.BlockSpec((Cout, 1), lambda n, s: (0, 0)),
            pl.BlockSpec((Cout, Cout), lambda n, s: (0, 0)),
            pl.BlockSpec((Cout, 1), lambda n, s: (0, 0)),
            pl.BlockSpec((1, Cout), lambda n, s: (0, 0)),
            pl.BlockSpec(memory_space=pltpu.MemorySpace.SMEM),   # b3 scalar
        ],
        out_specs=pl.BlockSpec((BN, Cin, TS), lambda n, s: (n, 0, s)),
        compiler_params=pltpu.CompilerParams(
            dimension_semantics=("parallel", "parallel")),
    )(xf, w1b, b1.reshape(Cout, 1), w2b, b2.reshape(Cout, 1),
      w3b, b3.reshape(1))

    if HWp != HW:
        out = out[:, :, :HW]
    return out.reshape(N, Cin, H, W)


# ----------------------------------------------------------------------------
# Parameter init (matches PyTorch 1x1 conv shapes, stored as 2-D matrices).
# ----------------------------------------------------------------------------
def init_params(key, in_channels, out_channels):
    ks = jax.random.split(key, 6)

    def conv1x1_p(kw, kb, cin, cout):
        scale = 1.0 / jnp.sqrt(float(cin))
        w = jax.random.normal(kw, (cout, cin), jnp.float32) * scale
        b = jax.random.normal(kb, (cout,), jnp.float32) * 0.01
        return w, b

    return [
        conv1x1_p(ks[0], ks[1], in_channels, out_channels),   # conv1
        conv1x1_p(ks[2], ks[3], out_channels, out_channels),  # conv2
        conv1x1_p(ks[4], ks[5], out_channels, 1),             # conv3
    ]


# ----------------------------------------------------------------------------
# Pure-JAX reference (sanity check against the kernel).
# ----------------------------------------------------------------------------
def attention_reference(x, params):
    (w1, b1), (w2, b2), (w3, b3) = params

    def conv1x1(h, w, b):
        return jnp.einsum('oc,nchw->nohw', w, h) + b[None, :, None, None]

    x1 = conv1x1(x, w1, b1)
    x2 = conv1x1(jax.nn.relu(x1), w2, b2)
    att = jax.nn.sigmoid(conv1x1(jax.nn.relu(x2), w3, b3))
    return x * att


if __name__ == "__main__":
    key = jax.random.PRNGKey(0)
    kx, kp = jax.random.split(key)

    N, CIN, COUT, H, W = 2, 32, 64, 16, 16
    x = jax.random.normal(kx, (N, CIN, H, W), jnp.float32)
    params = init_params(kp, CIN, COUT)

    out = attention_forward(x, params)
    out = jax.block_until_ready(out)
    assert out.shape == (N, CIN, H, W), out.shape

    ref = jax.block_until_ready(attention_reference(x, params))
    # bf16 MXU operands with f32 accumulation -> small tolerance.
    assert bool(jnp.allclose(out, ref, atol=3e-2, rtol=3e-2)), (
        float(jnp.max(jnp.abs(out - ref))))

    print("KERNEL_OK")
</pallas_src>

<mosaic_0001>
module attributes {stable_mosaic.version = 11 : i64} {
  func.func @_attention_kernel(%arg0: i32, %arg1: i32, %arg2: memref<1x32x256xf32, #tpu.memory_space<vmem>>, %arg3: memref<64x32xbf16, #tpu.memory_space<vmem>>, %arg4: memref<64x1xf32, #tpu.memory_space<vmem>>, %arg5: memref<64x64xbf16, #tpu.memory_space<vmem>>, %arg6: memref<64x1xf32, #tpu.memory_space<vmem>>, %arg7: memref<1x64xbf16, #tpu.memory_space<vmem>>, %arg8: memref<1xf32, #tpu.memory_space<smem>>, %arg9: memref<1x32x256xf32, #tpu.memory_space<vmem>>) attributes {dimension_semantics = [#tpu.dimension_semantics<parallel>, #tpu.dimension_semantics<parallel>], iteration_bounds = array<i64: 2, 1>, scalar_prefetch = 0 : i64, scratch_operands = 0 : i64, tpu.core_type = #tpu.core_type<tc>, window_params = [{transform_indices = @transform_0, window_bounds = array<i64: 1, 32, 256>}, {pipeline_mode = #tpu.pipeline_mode<synchronous>, transform_indices = @transform_1, window_bounds = array<i64: 64, 32>}, {pipeline_mode = #tpu.pipeline_mode<synchronous>, transform_indices = @transform_2, window_bounds = array<i64: 64, 1>}, {pipeline_mode = #tpu.pipeline_mode<synchronous>, transform_indices = @transform_3, window_bounds = array<i64: 64, 64>}, {pipeline_mode = #tpu.pipeline_mode<synchronous>, transform_indices = @transform_4, window_bounds = array<i64: 64, 1>}, {pipeline_mode = #tpu.pipeline_mode<synchronous>, transform_indices = @transform_5, window_bounds = array<i64: 1, 64>}, {transform_indices = @transform_6, window_bounds = array<i64: 1>}, {transform_indices = @transform_7, window_bounds = array<i64: 1, 32, 256>}]} {
    %c0 = arith.constant 0 : index
    %0 = memref.load %arg8[%c0] : memref<1xf32, #tpu.memory_space<smem>>
    %c0_0 = arith.constant 0 : index
    %c0_1 = arith.constant 0 : index
    %c0_2 = arith.constant 0 : index
    %1 = vector.load %arg2[%c0_0, %c0_1, %c0_2] : memref<1x32x256xf32, #tpu.memory_space<vmem>>, vector<1x32x256xf32>
    %2 = vector.shape_cast %1 : vector<1x32x256xf32> to vector<32x256xf32>
    %c0_3 = arith.constant 0 : index
    %c0_4 = arith.constant 0 : index
    %3 = vector.load %arg3[%c0_3, %c0_4] : memref<64x32xbf16, #tpu.memory_space<vmem>>, vector<64x32xbf16>
    %4 = arith.truncf %2 : vector<32x256xf32> to vector<32x256xbf16>
    %cst = arith.constant dense<0.000000e+00> : vector<64x256xf32>
    %5 = tpu.matmul %3, %4, %cst {dimension_numbers = #tpu.dot_dimension_numbers<[1], [0], [0], [1], [0, 0, 1, 1], [], []>} : vector<64x32xbf16>, vector<32x256xbf16>, vector<64x256xf32> -> vector<64x256xf32>
    %c0_5 = arith.constant 0 : index
    %c0_6 = arith.constant 0 : index
    %6 = vector.load %arg4[%c0_5, %c0_6] : memref<64x1xf32, #tpu.memory_space<vmem>>, vector<64x1xf32>
    %7 = vector.broadcast %6 : vector<64x1xf32> to vector<64x256xf32>
    %8 = arith.addf %5, %7 : vector<64x256xf32>
    %cst_7 = arith.constant 0.000000e+00 : f32
    %9 = vector.broadcast %cst_7 : f32 to vector<64x256xf32>
    %10 = arith.maximumf %8, %9 : vector<64x256xf32>
    %c0_8 = arith.constant 0 : index
    %c0_9 = arith.constant 0 : index
    %11 = vector.load %arg5[%c0_8, %c0_9] : memref<64x64xbf16, #tpu.memory_space<vmem>>, vector<64x64xbf16>
    %12 = arith.truncf %10 : vector<64x256xf32> to vector<64x256xbf16>
    %cst_10 = arith.constant dense<0.000000e+00> : vector<64x256xf32>
    %13 = tpu.matmul %11, %12, %cst_10 {dimension_numbers = #tpu.dot_dimension_numbers<[1], [0], [0], [1], [0, 0, 1, 1], [], []>} : vector<64x64xbf16>, vector<64x256xbf16>, vector<64x256xf32> -> vector<64x256xf32>
    %c0_11 = arith.constant 0 : index
    %c0_12 = arith.constant 0 : index
    %14 = vector.load %arg6[%c0_11, %c0_12] : memref<64x1xf32, #tpu.memory_space<vmem>>, vector<64x1xf32>
    %15 = vector.broadcast %14 : vector<64x1xf32> to vector<64x256xf32>
    %16 = arith.addf %13, %15 : vector<64x256xf32>
    %cst_13 = arith.constant 0.000000e+00 : f32
    %17 = vector.broadcast %cst_13 : f32 to vector<64x256xf32>
    %18 = arith.maximumf %16, %17 : vector<64x256xf32>
    %c0_14 = arith.constant 0 : index
    %c0_15 = arith.constant 0 : index
    %19 = vector.load %arg7[%c0_14, %c0_15] : memref<1x64xbf16, #tpu.memory_space<vmem>>, vector<1x64xbf16>
    %20 = arith.truncf %18 : vector<64x256xf32> to vector<64x256xbf16>
    %cst_16 = arith.constant dense<0.000000e+00> : vector<1x256xf32>
    %21 = tpu.matmul %19, %20, %cst_16 {dimension_numbers = #tpu.dot_dimension_numbers<[1], [0], [0], [1], [0, 0, 1, 1], [], []>} : vector<1x64xbf16>, vector<64x256xbf16>, vector<1x256xf32> -> vector<1x256xf32>
    %22 = vector.broadcast %0 : f32 to vector<1x256xf32>
    %23 = arith.addf %21, %22 : vector<1x256xf32>
    %cst_17 = arith.constant 0.000000e+00 : f32
    %24 = vector.broadcast %cst_17 : f32 to vector<1x256xf32>
    %25 = arith.subf %24, %23 : vector<1x256xf32>
    %26 = math.exp %25 : vector<1x256xf32>
    %cst_18 = arith.constant 1.000000e+00 : f32
    %27 = vector.broadcast %cst_18 : f32 to vector<1x256xf32>
    %28 = arith.addf %27, %26 : vector<1x256xf32>
    %29 = tpu.reciprocal %28 {approx = true} : vector<1x256xf32> -> vector<1x256xf32>
    %30 = vector.broadcast %29 : vector<1x256xf32> to vector<32x256xf32>
    %31 = arith.mulf %2, %30 : vector<32x256xf32>
    %c0_19 = arith.constant 0 : index
    %c0_20 = arith.constant 0 : index
    %c0_21 = arith.constant 0 : index
    %32 = vector.load %arg9[%c0_19, %c0_20, %c0_21] : memref<1x32x256xf32, #tpu.memory_space<vmem>>, vector<1x32x256xf32>
    %33 = vector.shape_cast %32 : vector<1x32x256xf32> to vector<32x256xf32>
    %34 = vector.shape_cast %31 : vector<32x256xf32> to vector<1x32x256xf32>
    tpu.vector_store %arg9[%c0_19, %c0_20, %c0_21], %34 {strides = array<i32>} : memref<1x32x256xf32, #tpu.memory_space<vmem>>, vector<1x32x256xf32>,
    return
  }
  func.func @transform_0(%arg0: i32, %arg1: i32) -> (i32, i32, i32) {
    %c0_i32 = arith.constant 0 : i32
    %c0_i32_0 = arith.constant 0 : i32
    return %arg0, %c0_i32, %arg1 : i32, i32, i32
  }
  func.func @transform_1(%arg0: i32, %arg1: i32) -> (i32, i32) {
    %c0_i32 = arith.constant 0 : i32
    %c0_i32_0 = arith.constant 0 : i32
    %c0_i32_1 = arith.constant 0 : i32
    return %c0_i32, %c0_i32_0 : i32, i32
  }
  func.func @transform_2(%arg0: i32, %arg1: i32) -> (i32, i32) {
    %c0_i32 = arith.constant 0 : i32
    %c0_i32_0 = arith.constant 0 : i32
    %c0_i32_1 = arith.constant 0 : i32
    return %c0_i32, %c0_i32_0 : i32, i32
  }
  func.func @transform_3(%arg0: i32, %arg1: i32) -> (i32, i32) {
    %c0_i32 = arith.constant 0 : i32
    %c0_i32_0 = arith.constant 0 : i32
    %c0_i32_1 = arith.constant 0 : i32
    return %c0_i32, %c0_i32_0 : i32, i32
  }
  func.func @transform_4(%arg0: i32, %arg1: i32) -> (i32, i32) {
    %c0_i32 = arith.constant 0 : i32
    %c0_i32_0 = arith.constant 0 : i32
    %c0_i32_1 = arith.constant 0 : i32
    return %c0_i32, %c0_i32_0 : i32, i32
  }
  func.func @transform_5(%arg0: i32, %arg1: i32) -> (i32, i32) {
    %c0_i32 = arith.constant 0 : i32
    %c0_i32_0 = arith.constant 0 : i32
    %c0_i32_1 = arith.constant 0 : i32
    return %c0_i32, %c0_i32_0 : i32, i32
  }
  func.func @transform_6(%arg0: i32, %arg1: i32) -> i32 {
    %c0_i32 = arith.constant 0 : i32
    %c0_i32_0 = arith.constant 0 : i32
    return %c0_i32 : i32
  }
  func.func @transform_7(%arg0: i32, %arg1: i32) -> (i32, i32, i32) {
    %c0_i32 = arith.constant 0 : i32
    %c0_i32_0 = arith.constant 0 : i32
    return %arg0, %c0_i32, %arg1 : i32, i32, i32
  }
}

</mosaic_0001>

<bundles_post_ra>
// kernel: tpu_custom_call.1
= control target key start
LH: loop header
LB: loop body
LE: loop exit
PB: predicated region body
PF: predicated region fallthrough
CT: control target
= control target key end

     0   :  { %s1351_s0 = inlined_call_operand.vmem [shape: f32[2,32,256], index: 0, kind: input, shape index: {}]   ;;  %s1352_s1 = inlined_call_operand.vmem [shape: bf16[64,32], index: 1, kind: input, shape index: {}]   ;;  %s1353_s2 = inlined_call_operand.vmem [shape: f32[64,1], index: 2, kind: input, shape index: {}]   ;;  %s1354_s3 = inlined_call_operand.vmem [shape: bf16[64,64], index: 3, kind: input, shape index: {}]   ;;  %s1355_s4 = inlined_call_operand.vmem [shape: f32[64,1], index: 4, kind: input, shape index: {}]   ;;  %s1356_s5 = inlined_call_operand.vmem [shape: bf16[1,64], index: 5, kind: input, shape index: {}]   ;;  %s1357_s6 = inlined_call_operand.<no memory space> [shape: f32[1], index: 6, kind: input, shape index: {}]   ;;  %s1358_s7 = inlined_call_operand.hbm [shape: f32[2,32,256], index: 7, kind: output, shape index: {}]  }
   0x1   :  { %12 = sst [smem:[#allocation2]] %s1357_s6 }
   0x2   :  { %13 = vsyncpa [#allocation4], 0 }
   0x3   :  { %15 = vsyncpa [#allocation4 + $0x1], 0  ;;  %s1105_s26 = smov 0   ;;  %s1107_s27 = smov 0  }
   0x4   :  { %s1109_s28 = smov 0   ;;  %s1111_s29 = smov 0  }
   0x5   :  { %s1113_s30 = smov 0   ;;  %s1115_s8 = smov 0  }
   0x6 LB: > { %s870_s6 = sadd.s32 4294967295, %s1056_s8   ;;  %s871_s9 = sadd.s32 4294967294, %s1056_s8   ;;  %s1056_s8 = sphi %s1115_s8, %s21_s8   ;;  %s1052_s30 = sphi %s1113_s30, %s1365_s30   ;;  %s1048_s29 = sphi %s1111_s29, %s1364_s29   ;;  %s1044_s28 = sphi %s1109_s28, %s1363_s28   ;;  %s1040_s27 = sphi %s1107_s27, %s1362_s27   ;;  %s1036_s26 = sphi %s1105_s26, %s1361_s26  }
   0x7   : > { %s33_s10 = sadd.s32 1, %s1052_s30  ;;  %s196_s11 = sadd.s32 1, %s1044_s28 }
   0x8   : > { %p35_p0 = scmp.ge.s32.totalorder %s33_s10, 2  ;;  %p206_p1 = scmp.ne.s32.totalorder %s1044_s28, %s1040_s27 }
   0x9   : > { %p207_p2 = scmp.eq.s32.totalorder %s870_s6, 1  ;;  %p212_p3 = scmp.ne.s32.totalorder %s1040_s27, %s1036_s26 }
   0xa   : > { %s1367_s10 = smov (%p35_p0, %s33_s10), 0  ;;  %p213_p5 = scmp.eq.s32.totalorder %s871_s9, 1 }
   0xb   : > { %p1145_p4 = por %p207_p2, %p206_p1  ;;  %s191_s13 = ssub.s32 %s1052_s30, %s1367_s10 }
   0xc   : > { %p874_p6 = scmp.ge.s32.totalorder %s1056_s8, 1  ;;  %p194_p7 = scmp.eq.s32.totalorder %s191_s13, 0 }
   0xd   : > { %p1152_p8 = por %p213_p5, %p212_p3  ;;  %p262_p9 = scmp.lt.s32.totalorder %s1056_s8, 3 }
   0xe   : > { %s1158_s15 = scalar_select %p194_p7, %s1044_s28, %s196_s11  }
   0xf   : > { %p263_p10 = pnand %p874_p6, %p262_p9 }
  0x10   : > { %p299_p11 = scmp.lt.s32.totalorder (!%p263_p10), %s1048_s29, 1  ;;  %v1058_v0 = vmov (!%p263_p10), 0   ;;  %v331_v1 = vld [vmem:[%s1353_s2] sm:$0xff] (!%p263_p10)  ;;  %v333_v2 = vld [vmem:[%s1353_s2 + $0x10] sm:$0xff] (!%p263_p10)  ;;  %v332_v3 = vld [vmem:[%s1353_s2 + $0x8] sm:$0xff] (!%p263_p10)  ;;  %vm399_vm0 = vcmask (!%p263_p10), 261120  }
  0x11   : > { %266 = sbr.rel (%p263_p10) target bundleno = 801 (0x321), region = 48  ;;  %444 = vmatprep.mubr.bf16.mxu0 (!%p263_p10), %v1058_v0  ;;  %960 = vset.pattern.permute.xlu0 (!%p263_p10), %v1058_v0  ;;  %v334_v4 = vld [vmem:[%s1353_s2 + $0x18] sm:$0xff] (!%p263_p10)  ;;  %v335_v17 = vld [vmem:[%s1353_s2 + $0x20] sm:$0xff] (!%p263_p10)  ;;  %v336_v19 = vld [vmem:[%s1353_s2 + $0x28] sm:$0xff] (!%p263_p10)  ;;  %vm585_vm1 = vcmask (!%p263_p10), 523264   ;;  %s310_s13 = sld [smem:[#allocation2]] (!%p263_p10) }
  0x12   : > { %961 = vset.pattern.permute.xlu1 (!%p263_p10), %v1058_v0  ;;  %630 = vmatprep.mubr.bf16.mxu1 (!%p263_p10), %v1058_v0  ;;  %v962_v18 = vld [vmem:[%s1352_s1] sm:$0xff] (!%p263_p10)   ;;  %v337_v20 = vld [vmem:[%s1353_s2 + $0x30] sm:$0xff] (!%p263_p10)  ;;  %v338_v21 = vld [vmem:[%s1353_s2 + $0x38] sm:$0xff] (!%p263_p10)  ;;  %s901_s18 = sshll.u32 (!%p263_p10), %s1048_s29, 10  ;;  %s1059_s25 = smov (!%p263_p10), [#allocation3]  }
  0x13   : > { %341 = vperm.xlu0 (!%p263_p10), %960, %v331_v1   ;;  %351 = vperm.xlu1 (!%p263_p10), %961, %v333_v2   ;;  %v517_v22 = vld [vmem:[%s1355_s4] sm:$0xff] (!%p263_p10)  ;;  %v518_v23 = vld [vmem:[%s1355_s4 + $0x8] sm:$0xff] (!%p263_p10)  ;;  %v519_v25 = vld [vmem:[%s1355_s4 + $0x10] sm:$0xff] (!%p263_p10)  ;;  %s1295_s23 = scalar_lea.hbm (!%p263_p10), %s1358_s7, %s901_s18  ;;  %s982_s6 = sshll.u32 (!%p263_p10), %s1059_s25, 4  ;;  %s983_s6 = int_to_ptr.vmem [resolvable:$false] %s982_s6 }
  0x14   : > { %v963_v24 = vld [vmem:[%s1352_s1 + $0x8] sm:$0xff] (!%p263_p10)   ;;  %v520_v26 = vld [vmem:[%s1355_s4 + $0x18] sm:$0xff] (!%p263_p10)  ;;  %v521_v27 = vld [vmem:[%s1355_s4 + $0x20] sm:$0xff] (!%p263_p10)  ;;  %s984_s9 = scalar_lea.vmem (!%p263_p10), %s983_s6, 2048 }
  0x15   : > { %v522_v28 = vld [vmem:[%s1355_s4 + $0x28] sm:$0xff] (!%p263_p10)  ;;  %v964_v29 = vld [vmem:[%s1352_s1 + $0x10] sm:$0xff] (!%p263_p10)   ;;  %v524_v31 = vld [vmem:[%s1355_s4 + $0x38] sm:$0xff] (!%p263_p10) }
  0x16   : > { %v523_v30 = vld [vmem:[%s1355_s4 + $0x30] sm:$0xff] (!%p263_p10)  ;;  %v965_v32 = vld [vmem:[%s1352_s1 + $0x18] sm:$0xff] (!%p263_p10)  }
  0x17   : > { %346 = vperm.xlu0 (!%p263_p10), %960, %v332_v3   ;;  %356 = vperm.xlu1 (!%p263_p10), %961, %v334_v4  }
  0x18   : > { %s300_s16 = scalar_select %p299_p11, %s1048_s29, 1 }
  0x1a   : > { %s900_s17 = sshll.u32 %s300_s16, 6  ;;  %s295_s16 = sand.u32 1, %s1040_s27  }
  0x1b   : > { %s306_s24 = scalar_lea.vmem %s1351_s0, %s900_s17  ;;  %361 = vperm.xlu0 %960, %v335_v17   ;;  %366 = vperm.xlu1 %961, %v336_v19   ;;  %s875_s17 = sshll.u32 %s295_s16, 6 }
  0x1c   : > { %v1181_v5 = vld [vmem:[%s306_s24 + $0x8] sm:$0xff]  ;;  %v1183_v6 = vld [vmem:[%s306_s24 + $0x18] sm:$0xff]  ;;  %v1185_v7 = vld [vmem:[%s306_s24] sm:$0xff]  ;;  %s297_s19 = scalar_lea.vmem [#allocation3], %s875_s17  ;;  %s1305_s29 = scalar_lea.sflag [#allocation4], %s295_s16 }
  0x1d   : > { %v328_v8 = vpack.c.bf16 %v1183_v6, %v1181_v5  ;;  %v1189_v9 = vld [vmem:[%s306_s24 + $0x10] sm:$0xff]  ;;  %v1191_v10 = vld [vmem:[%s306_s24 + $0x28] sm:$0xff]  ;;  %v1193_v11 = vld [vmem:[%s306_s24 + $0x38] sm:$0xff]  ;;  %s791_s20 = sshll.u32 %s297_s19, 4  ;;  %s1297_s20 = int_to_ptr.vmem [resolvable:$true] %s791_s20 }
  0x1e   : > { %v327_v12 = vpack.c.bf16 %v1189_v9, %v1185_v7  ;;  %v330_v13 = vpack.c.bf16 %v1193_v11, %v1191_v10  ;;  %v1199_v14 = vld [vmem:[%s306_s24 + $0x20] sm:$0xff]  ;;  %v1201_v15 = vld [vmem:[%s306_s24 + $0x30] sm:$0xff]  ;;  %s978_s24 = scalar_lea.vmem %s1297_s20, 1024  ;;  %p985_p1 = scmp.lt.s32.totalorder %s1297_s20, %s983_s6 }
  0x1f   : > { %412 = vmatprep.subr.bf16.mxu0 %v328_v8  ;;  %v329_v16 = vpack.c.bf16 %v1201_v15, %v1199_v14  ;;  %371 = vperm.xlu0 %960, %v337_v20   ;;  %p979_p12 = scmp.ne.s32.totalorder %s1297_s20, %s978_s24  ;;  %p986_p2 = scmp.lt.s32.totalorder %s984_s9, %s978_s24 }
  0x20   : > { %413 = vmatpush1.bf16.msra.mxu0 %v327_v12  ;;  %376 = vperm.xlu1 %961, %v338_v21  }
  0x21   : > { %414 = vmatprep.subr.bf16.mxu0 %v330_v13  ;;  %p980_p13 = pnand %p979_p12, %p1145_p4  ;;  %p987_p3 = por %p986_p2, %p985_p1 }
  0x23   : > { %527 = vperm.xlu0 %960, %v517_v22   ;;  %p981_p0 = pneg %p980_p13 }
  0x24   : > { %415 = vmatpush1.bf16.msra.mxu0 %v329_v16  ;;  %532 = vperm.xlu1 %961, %v518_v23  }
  0x25   : > { %p988_p5 = pnand %p987_p3, %p981_p0 }
  0x27   : > { %882 = vmatmul.mubr.msk.bf16.vlgmr.msra.gmra.mrb[0].mxu0 %vm399_vm0, %v962_v18  ;;  %537 = vperm.xlu0 %960, %v519_v25  }
  0x28   : > { %454 = vmatprep.mubr.bf16.mxu0 %v1058_v0  ;;  %542 = vperm.xlu1 %961, %v520_v26  }
  0x2b   : > { %547 = vperm.xlu0 %960, %v521_v27  }
  0x2c   : > { %552 = vperm.xlu1 %961, %v522_v28  }
  0x2f   : > { %883 = vmatmul.mubr.msk.bf16.gmra.mrb[4].mxu0 %vm399_vm0, %v963_v24  ;;  %557 = vperm.xlu0 %960, %v523_v30  }
  0x30   : > { %464 = vmatprep.mubr.bf16.mxu0 %v1058_v0  ;;  %562 = vperm.xlu1 %961, %v524_v31  }
  0x37   : > { %884 = vmatmul.mubr.msk.bf16.gmra.mrb[8].mxu0 %vm399_vm0, %v964_v29 }
  0x38   : > { %474 = vmatprep.mubr.bf16.mxu0 %v1058_v0 }
  0x3f   : > { %885 = vmatmul.mubr.msk.bf16.gmra.mrb[12].mxu0 %vm399_vm0, %v965_v32 }
  0x40   : > { %732 = vmatprep.mubr.bf16.mxu0 %v1058_v0 }
  0x92   : > { %v342_v33 = vpop.permute.xlu0 %341  ;;  %v352_v42 = vpop.permute.xlu1 %351 }
  0x96   : > { %v347_v37 = vpop.permute.xlu0 %346  ;;  %v357_v53 = vpop.permute.xlu1 %356 }
  0x9a   : > { %v362_v1 = vpop.permute.xlu0 %361  ;;  %v367_v12 = vpop.permute.xlu1 %366 }
  0x9e   : > { %v372_v25 = vpop.permute.xlu0 %371 }
  0x9f   : > { %v377_v30 = vpop.permute.xlu1 %376 }
  0xfa   : > { %v446_v34 = vpop.f32.mrb[0].mxu0 }
  0xfb   : > { %v447_v35 = vadd.f32 %v446_v34, %v342_v33  ;;  %v448_v36 = vpop.f32.mrb[1].mxu0 }
  0xfc   : > { %v449_v38 = vadd.f32 %v448_v36, %v342_v33  ;;  %v450_v39 = vpop.f32.mrb[2].mxu0 }
  0xfd   : > { %v451_v40 = vadd.f32 %v450_v39, %v347_v37  ;;  %v452_v41 = vpop.f32.mrb[3].mxu0  ;;  %v485_v44 = vmax.f32 %v447_v35, 0.0 }
  0xfe   : > { %v453_v43 = vadd.f32 %v452_v41, %v347_v37  ;;  %v486_v46 = vmax.f32 %v449_v38, 0.0 }
  0xff   : > { %v487_v45 = vmax.f32 %v451_v40, 0.0 }
 0x100   : > { %v488_v47 = vmax.f32 %v453_v43, 0.0  ;;  %v967_v43 = vld [vmem:[%s1354_s3 + $0x8] sm:$0xff]  }
 0x101   : > { %v509_v48 = vpack.c.bf16 %v487_v45, %v485_v44  ;;  %v968_v44 = vld [vmem:[%s1354_s3 + $0x10] sm:$0xff]   ;;  %v969_v45 = vld [vmem:[%s1354_s3 + $0x18] sm:$0xff]  }
 0x102   : > { %v456_v49 = vpop.f32.mrb[4].mxu0  ;;  %v510_v50 = vpack.c.bf16 %v488_v47, %v486_v46  ;;  %v528_v46 = vpop.permute.xlu0 %527 }
 0x103   : > { %v457_v51 = vadd.f32 %v456_v49, %v352_v42  ;;  %v458_v52 = vpop.f32.mrb[5].mxu0 }
 0x104   : > { %v459_v54 = vadd.f32 %v458_v52, %v352_v42  ;;  %v460_v55 = vpop.f32.mrb[6].mxu0  ;;  %598 = vmatprep.subr.bf16.mxu1 %v510_v50  ;;  %v966_v42 = vld [vmem:[%s1354_s3] sm:$0xff]   ;;  %v533_v50 = vpop.permute.xlu1 %532 }
 0x105   : > { %v461_v56 = vadd.f32 %v460_v55, %v357_v53  ;;  %v462_v57 = vpop.f32.mrb[7].mxu0  ;;  %599 = vmatpush1.bf16.msra.mxu1 %v509_v48  ;;  %v489_v59 = vmax.f32 %v457_v51, 0.0 }
 0x106   : > { %v463_v58 = vadd.f32 %v462_v57, %v357_v53  ;;  %v490_v61 = vmax.f32 %v459_v54, 0.0 }
 0x107   : > { %v491_v60 = vmax.f32 %v461_v56, 0.0 }
 0x108   : > { %v492_v62 = vmax.f32 %v463_v58, 0.0 }
 0x109   : > { %v511_v63 = vpack.c.bf16 %v491_v60, %v489_v59  ;;  %v538_v60 = vpop.permute.xlu0 %537 }
 0x10a   : > { %v512_v2 = vpack.c.bf16 %v492_v62, %v490_v61  ;;  %v466_v3 = vpop.f32.mrb[8].mxu0 }
 0x10b   : > { %v467_v4 = vadd.f32 %v466_v3, %v362_v1  ;;  %v468_v8 = vpop.f32.mrb[9].mxu0 }
 0x10c   : > { %v469_v13 = vadd.f32 %v468_v8, %v362_v1  ;;  %v470_v16 = vpop.f32.mrb[10].mxu0  ;;  %600 = vmatprep.subr.bf16.mxu1 %v512_v2  ;;  %v543_v2 = vpop.permute.xlu1 %542 }
 0x10d   : > { %v471_v17 = vadd.f32 %v470_v16, %v367_v12  ;;  %v472_v18 = vpop.f32.mrb[11].mxu0  ;;  %601 = vmatpush1.bf16.msra.mxu1 %v511_v63  ;;  %v493_v20 = vmax.f32 %v467_v4, 0.0 }
 0x10e   : > { %v473_v19 = vadd.f32 %v472_v18, %v367_v12  ;;  %v494_v22 = vmax.f32 %v469_v13, 0.0 }
 0x10f   : > { %v495_v21 = vmax.f32 %v471_v17, 0.0 }
 0x110   : > { %v496_v23 = vmax.f32 %v473_v19, 0.0 }
 0x111   : > { %v513_v24 = vpack.c.bf16 %v495_v21, %v493_v20  ;;  %v548_v21 = vpop.permute.xlu0 %547 }
 0x112   : > { %v514_v26 = vpack.c.bf16 %v496_v23, %v494_v22  ;;  %v476_v27 = vpop.f32.mrb[12].mxu0 }
 0x113   : > { %v477_v28 = vadd.f32 %v476_v27, %v372_v25  ;;  %v478_v29 = vpop.f32.mrb[13].mxu0 }
 0x114   : > { %v479_v31 = vadd.f32 %v478_v29, %v372_v25  ;;  %v480_v32 = vpop.f32.mrb[14].mxu0  ;;  %602 = vmatprep.subr.bf16.mxu1 %v514_v26  ;;  %v553_v26 = vpop.permute.xlu1 %552 }
 0x115   : > { %v481_v33 = vadd.f32 %v480_v32, %v377_v30  ;;  %v482_v34 = vpop.f32.mrb[15].mxu0  ;;  %603 = vmatpush1.bf16.msra.mxu1 %v513_v24  ;;  %v497_v36 = vmax.f32 %v477_v28, 0.0 }
 0x116   : > { %v483_v35 = vadd.f32 %v482_v34, %v377_v30  ;;  %v498_v38 = vmax.f32 %v479_v31, 0.0 }
 0x117   : > { %v499_v37 = vmax.f32 %v481_v33, 0.0 }
 0x118   : > { %v500_v39 = vmax.f32 %v483_v35, 0.0 }
 0x119   : > { %v515_v40 = vpack.c.bf16 %v499_v37, %v497_v36  ;;  %v558_v37 = vpop.permute.xlu0 %557 }
 0x11a   : > { %v516_v41 = vpack.c.bf16 %v500_v39, %v498_v38 }
 0x11c   : > { %604 = vmatprep.subr.bf16.mxu1 %v516_v41 }
 0x11d   : > { %605 = vmatpush1.bf16.msra.mxu1 %v515_v40 }
 0x120   : > { %890 = vmatmul.mubr.msk.bf16.vlgmr.msra.gmra.mrb[0].mxu1 %vm585_vm1, %v966_v42  ;;  %v563_v42 = vpop.permute.xlu1 %562 }
 0x121   : > { %640 = vmatprep.mubr.bf16.mxu1 %v1058_v0 }
 0x128   : > { %891 = vmatmul.mubr.msk.bf16.gmra.mrb[4].mxu1 %vm585_vm1, %v967_v43 }
 0x129   : > { %650 = vmatprep.mubr.bf16.mxu1 %v1058_v0 }
 0x130   : > { %892 = vmatmul.mubr.msk.bf16.gmra.mrb[8].mxu1 %vm585_vm1, %v968_v44 }
 0x131   : > { %660 = vmatprep.mubr.bf16.mxu1 %v1058_v0 }
 0x138   : > { %893 = vmatmul.mubr.msk.bf16.gmra.mrb[12].mxu1 %vm585_vm1, %v969_v45 }
 0x1f3   : > { %v632_v47 = vpop.f32.mrb[0].mxu1 }
 0x1f4   : > { %v633_v48 = vadd.f32 %v632_v47, %v528_v46  ;;  %v634_v49 = vpop.f32.mrb[1].mxu1 }
 0x1f5   : > { %v635_v51 = vadd.f32 %v634_v49, %v528_v46  ;;  %v636_v52 = vpop.f32.mrb[2].mxu1 }
 0x1f6   : > { %v637_v53 = vadd.f32 %v636_v52, %v533_v50  ;;  %v638_v54 = vpop.f32.mrb[3].mxu1  ;;  %v671_v56 = vmax.f32 %v633_v48, 0.0 }
 0x1f7   : > { %v639_v55 = vadd.f32 %v638_v54, %v533_v50  ;;  %v672_v58 = vmax.f32 %v635_v51, 0.0  ;;  %v687_v54 = vld [vmem:[%s1356_s5] sm:$0x1] }
 0x1f8   : > { %v673_v57 = vmax.f32 %v637_v53, 0.0 }
 0x1f9   : > { %v674_v0 = vmax.f32 %v639_v55, 0.0  ;;  %v696_v55 = vstv %s310_s13 }
 0x1fa   : > { %v688_v59 = vpack.c.bf16 %v673_v57, %v671_v56 }
 0x1fb   : > { %v689_v61 = vpack.c.bf16 %v674_v0, %v672_v58  ;;  %v642_v62 = vpop.f32.mrb[4].mxu1 }
 0x1fc   : > { %v643_v63 = vadd.f32 %v642_v62, %v538_v60  ;;  %v644_v1 = vpop.f32.mrb[5].mxu1 }
 0x1fd   : > { %v645_v3 = vadd.f32 %v644_v1, %v538_v60  ;;  %v646_v4 = vpop.f32.mrb[6].mxu1  ;;  %700 = vmatprep.subr.bf16.mxu0 %v689_v61 }
 0x1fe   : > { %v647_v8 = vadd.f32 %v646_v4, %v543_v2  ;;  %v648_v12 = vpop.f32.mrb[7].mxu1  ;;  %701 = vmatpush1.bf16.msra.mxu0 %v688_v59  ;;  %v675_v16 = vmax.f32 %v643_v63, 0.0 }
 0x1ff   : > { %v649_v13 = vadd.f32 %v648_v12, %v543_v2  ;;  %v676_v18 = vmax.f32 %v645_v3, 0.0 }
 0x200   : > { %v677_v17 = vmax.f32 %v647_v8, 0.0  ;;  %v751_v8 = vlaneseq }
 0x201   : > { %v678_v19 = vmax.f32 %v649_v13, 0.0 }
 0x202   : > { %v690_v20 = vpack.c.bf16 %v677_v17, %v675_v16  ;;  %v752_v13 = vshrl.u32 %v751_v8, 7 }
 0x203   : > { %v691_v22 = vpack.c.bf16 %v678_v19, %v676_v18  ;;  %v652_v23 = vpop.f32.mrb[8].mxu1 }
 0x204   : > { %v653_v24 = vadd.f32 %v652_v23, %v548_v21  ;;  %v654_v25 = vpop.f32.mrb[9].mxu1  ;;  %v753_v16 = vsub.s32 0, %v752_v13 }
 0x205   : > { %v655_v27 = vadd.f32 %v654_v25, %v548_v21  ;;  %v656_v28 = vpop.f32.mrb[10].mxu1  ;;  %702 = vmatprep.subr.bf16.mxu0 %v691_v22 }
 0x206   : > { %v657_v29 = vadd.f32 %v656_v28, %v553_v26  ;;  %v658_v30 = vpop.f32.mrb[11].mxu1  ;;  %703 = vmatpush1.bf16.msra.mxu0 %v690_v20  ;;  %v679_v32 = vmax.f32 %v653_v24, 0.0 }
 0x207   : > { %v659_v31 = vadd.f32 %v658_v30, %v553_v26  ;;  %v680_v34 = vmax.f32 %v655_v27, 0.0 }
 0x208   : > { %v681_v33 = vmax.f32 %v657_v29, 0.0 }
 0x209   : > { %v682_v35 = vmax.f32 %v659_v31, 0.0 }
 0x20a   : > { %v692_v36 = vpack.c.bf16 %v681_v33, %v679_v32 }
 0x20b   : > { %v693_v38 = vpack.c.bf16 %v682_v35, %v680_v34  ;;  %v662_v39 = vpop.f32.mrb[12].mxu1 }
 0x20c   : > { %v663_v40 = vadd.f32 %v662_v39, %v558_v37  ;;  %v664_v41 = vpop.f32.mrb[13].mxu1 }
 0x20d   : > { %v665_v43 = vadd.f32 %v664_v41, %v558_v37  ;;  %v666_v44 = vpop.f32.mrb[14].mxu1  ;;  %704 = vmatprep.subr.bf16.mxu0 %v693_v38 }
 0x20e   : > { %v667_v45 = vadd.f32 %v666_v44, %v563_v42  ;;  %v668_v46 = vpop.f32.mrb[15].mxu1  ;;  %705 = vmatpush1.bf16.msra.mxu0 %v692_v36  ;;  %v683_v48 = vmax.f32 %v663_v40, 0.0 }
 0x20f   : > { %v669_v47 = vadd.f32 %v668_v46, %v563_v42  ;;  %v684_v50 = vmax.f32 %v665_v43, 0.0 }
 0x210   : > { %v685_v49 = vmax.f32 %v667_v45, 0.0 }
 0x211   : > { %v686_v51 = vmax.f32 %v669_v47, 0.0 }
 0x212   : > { %v694_v52 = vpack.c.bf16 %v685_v49, %v683_v48 }
 0x213   : > { %v695_v53 = vpack.c.bf16 %v686_v51, %v684_v50 }
 0x215   : > { %706 = vmatprep.subr.bf16.mxu0 %v695_v53 }
 0x216   : > { %707 = vmatpush1.bf16.msra.mxu0 %v694_v52 }
 0x219   : > { %894 = vmatmul.mubr.msk.bf16.vlgmr.msra.gmra.mrb[16].mxu0 %vm585_vm1, %v687_v54 }
 0x2ec   : > { %v734_v56 = vpop.f32.mrb[16].mxu0 }
 0x2ed   : > { %v735_v57 = vadd.f32 %v734_v56, %v696_v55  ;;  %v736_v58 = vpop.f32.mrb[17].mxu0 }
 0x2ee   : > { %v737_v0 = vadd.f32 %v736_v58, %v696_v55  ;;  %v738_v59 = vpop.f32.mrb[18].mxu0 }
 0x2ef   : > { %v741_v60 = vsub.f32 0.0, %v735_v57  ;;  %v739_v61 = vpop.f32.mrb[19].mxu0 }
 0x2f0   : > { %v742_v62 = vsub.f32 0.0, %v737_v0 }
 0x2f1   : > { %v743_v63 = vmul.f32 1.442695, %v741_v60 }
 0x2f2   : > { %v745_v1 = vmul.f32 1.442695, %v742_v62 }
 0x2f3   : > { %970 = vpow2.f32 %v743_v63 }
 0x2f4   : > { %972 = vpow2.f32 %v745_v1 }
 0x2fd   : > { %v971_v2 = vpop.eup %970 }
 0x2fe   : > { %v973_v3 = vpop.eup %972  ;;  %v747_v4 = vadd.f32 1.0, %v971_v2 }
 0x2ff   : > { %v748_v12 = vadd.f32 1.0, %v973_v3 }
 0x300   : > { %974 = vrcp.f32 %v747_v4 }
 0x301   : > { %976 = vrcp.f32 %v748_v12 }
 0x30a   : > { %v975_v17 = vpop.eup %974 }
 0x30b   : > { %v977_v18 = vpop.eup %976  ;;  %v754_v19 = vrot.slane %v975_v17, %v753_v16 }
 0x30c   : > { %v758_v20 = vrot.slane %v977_v18, %v753_v16 }
 0x30d   : > { %v759_v21 = vmul.f32 %v754_v19, %v1185_v7  ;;  %v761_v22 = vmul.f32 %v754_v19, %v1189_v9  ;;  %v763_v23 = vmul.f32 %v754_v19, %v1199_v14  ;;  %v765_v24 = vmul.f32 %v754_v19, %v1201_v15 }
 0x30e   : > { %v760_v25 = vmul.f32 %v758_v20, %v1181_v5  ;;  %v762_v7 = vmul.f32 %v758_v20, %v1183_v6  ;;  %v764_v9 = vmul.f32 %v758_v20, %v1191_v10  ;;  %v766_v14 = vmul.f32 %v758_v20, %v1193_v11 }
 0x30f   : > { %767 = vst [vmem:[%s297_s19] sm:$0xff] %v759_v21  ;;  %769 = vst [vmem:[%s297_s19 + $0x10] sm:$0xff] %v761_v22 }
 0x310   : > { %771 = vst [vmem:[%s297_s19 + $0x20] sm:$0xff] %v763_v23  ;;  %773 = vst [vmem:[%s297_s19 + $0x30] sm:$0xff] %v765_v24 }
 0x311   : > { %768 = vst [vmem:[%s297_s19 + $0x8] sm:$0xff] %v760_v25  ;;  %770 = vst [vmem:[%s297_s19 + $0x18] sm:$0xff] %v762_v7 }
 0x312   : > { %772 = vst [vmem:[%s297_s19 + $0x28] sm:$0xff] %v764_v9  ;;  %774 = vst [vmem:[%s297_s19 + $0x38] sm:$0xff] %v766_v14 }
 0x313   : > { %991 = shalt.err (!%p988_p5)
}
 0x314   : > { %s992_s11 = scalar_lea.hbm %s1295_s23, 1024  ;;  %s996_s17 = scalar_lea.hbm %s1358_s7, 2048 }
 0x315   : > { %p993_p6 = scmp.ne.s32.totalorder %s1295_s23, %s992_s11  ;;  %p997_p10 = scmp.lt.u32.totalorder %s1295_s23, %s1358_s7 }
 0x316   : > { %p998_p11 = scmp.lt.u32.totalorder %s996_s17, %s992_s11  ;;  %p1000_p13 = scmp.lt.u32.totalorder %s992_s11, %s1295_s23 }
 0x317   : > { %p994_p7 = pnand %p993_p6, %p1145_p4 }
 0x318   : > { %p999_p12 = por %p998_p11, %p997_p10 }
 0x319   : > { %p995_p9 = pneg %p994_p7 }
 0x31a   : > { %p1001_p0 = por %p1000_p13, %p999_p12 }
 0x31c   : > { %p1002_p1 = pnand %p1001_p0, %p995_p9 }
 0x31e   : > { %1005 = shalt.err (!%p1002_p1)
}
 0x31f   : > { %s1060_s21 = smov 256   ;;  %s1061_s22 = smov 16  }
 0x320   : > { %902 = dma.vmem_to_hbm [thread:$0]  (%p1145_p4), %s1297_s20, 1024, %s1295_s23, %s1305_s29, %s1060_s21, %s1060_s21, %s1061_s22  }
 0x321 PF: > { %p908_p2 = scmp.ge.s32.totalorder %s1056_s8, 2  ;;  %s806_s24 = sand.u32 1, %s1036_s26  }
 0x322   : > { %s807_s25 = scalar_lea.sflag [#allocation4], %s806_s24 }
 0x323   : > { %p905_p3 = pnand %p908_p2, %p1152_p8 }
 0x325   : > { %1031 = dma.done.wait (!%p905_p3), %s807_s25, 1024  }
 0x326   : > { %1033 = vsyncadd (!%p905_p3), %s807_s25, 4294966272  ;;  %s21_s8 = sadd.s32 1, %s1056_s8   ;;  %s1361_s26 = smov %s1040_s27 }
 0x327   : > { %p18_p5 = scmp.ge.s32.totalorder %s21_s8, 4   ;;  %s1362_s27 = smov %s1044_s28 }
 0x328   : > { %s1363_s28 = smov %s1158_s15  ;;  %s1364_s29 = smov %s1052_s30 }
 0x329   : > { %s1365_s30 = smov %s1367_s10  ;;  %20 = sbr.rel (!%p18_p5) target bundleno = 6 (0x6), region = 83 }
 0x330   :  { %812 = vsyncpa [#allocation4], 1 }
 0x331   :  { %814 = vsyncpa [#allocation4 + $0x1], 1 }

</bundles_post_ra>
